<compile_context>
chip_gen: v7x
topology: tpu7x:2x2x1
jax: 0.10.0
libtpu: 0.0.40
codegen_flags: <defaults>
</compile_context>

<pallas_src>
import jax
import jax.numpy as jnp
from jax.experimental import pallas as pl
from jax.experimental.pallas import tpu as pltpu

_LANE = 128


def _sc_kernel(x_ref, w_ref, b_ref, o_ref):
    """1x1 conv (channel contraction) + sigmoid on one (tile_s, 128) slab.

    x_ref: (1, C, tile_s, 128)  VMEM   one batch element, one spatial tile
    w_ref: (C,)                 SMEM   conv weight (out_channels = 1)
    b_ref: (1,)                 SMEM   conv bias
    o_ref: (1, tile_s, 128)     VMEM
    """
    C = x_ref.shape[1]
    # Unrolled per-channel FMA on the VPU; SMEM scalars broadcast for free.
    # Exactly one accumulator live (no extra acc-sized temporaries).
    acc = x_ref[0, 0].astype(jnp.float32) * w_ref[0] + b_ref[0]
    for c in range(1, C):
        acc = acc + x_ref[0, c].astype(jnp.float32) * w_ref[c]
    o_ref[0] = jax.nn.sigmoid(acc).astype(o_ref.dtype)


def _vmem_budget_bytes():
    """(double-buffered working-set budget, vmem_limit_bytes) per generation."""
    try:
        cap = int(pltpu.get_tpu_info().vmem_capacity_bytes)
    except Exception:
        cap = 64 * 1024 * 1024          # conservative: v7x per-TC physical VMEM
    limit = min(int(cap * 0.75), 96 * 1024 * 1024)   # 48 MiB on v7x, 96 MiB on v5e/v6e
    return limit // 2, limit            # keep ~2x headroom over the working set


def _tile_plan(s_total, batch, C, dtype_bytes, budget_bytes):
    """Pick the spatial tile (in 128-lane sublane rows)."""
    sub = 8 * max(1, 4 // dtype_bytes)  # sublane-packing multiple: 8/16/32 for f32/bf16/i8
    if s_total <= sub:
        return s_total                  # block == full sublane extent (allowed)
    # Largest tile whose double-buffered (C in + 1 out) working set fits the budget.
    per_sublane = 2 * (C + 1) * _LANE * dtype_bytes
    t_budget = max(sub, (budget_bytes // per_sublane) // sub * sub)
    # Keep >= ~8 total grid steps so both v7x TCs and the pipeline have work.
    want_tiles = max(1, -(-8 // batch))
    t_steps = -(-s_total // want_tiles)
    t_steps = max(sub, (t_steps // sub) * sub)
    t = min(t_budget, t_steps)
    return min(t, -(-s_total // sub) * sub)


def sc_module_forward(x_nchw, weight, bias):
    """x_nchw: (B, C, H, W); weight: (1, C, 1, 1); bias: (1,) -> (B, 1, H, W)."""
    B, C, H, W = x_nchw.shape
    HW = H * W
    dtype_bytes = jnp.dtype(x_nchw.dtype).itemsize

    # Flatten H*W and pad only up to the next 128-lane row (<= 127 elements per
    # (b, c) row; zero pad when H*W is already a multiple of 128).
    s_total = -(-HW // _LANE)
    hw_pad = s_total * _LANE
    x = x_nchw.reshape(B, C, HW)
    if hw_pad != HW:
        x = jnp.pad(x, ((0, 0), (0, 0), (0, hw_pad - HW)))
    x = x.reshape(B, C, s_total, _LANE)

    w = weight.reshape(C).astype(jnp.float32)
    b = bias.reshape(1).astype(jnp.float32)

    budget, vmem_limit = _vmem_budget_bytes()
    tile_s = _tile_plan(s_total, B, C, dtype_bytes, budget)
    n_s = -(-s_total // tile_s)         # ragged last block handled by Pallas

    cost = pl.CostEstimate(
        flops=int(2 * B * C * HW),
        transcendentals=int(2 * B * HW),          # sigmoid ~ exp + reciprocal
        bytes_accessed=int(B * C * HW * dtype_bytes + B * HW * dtype_bytes),
    )

    out = pl.pallas_call(
        _sc_kernel,
        out_shape=jax.ShapeDtypeStruct((B, s_total, _LANE), x.dtype),
        grid_spec=pltpu.PrefetchScalarGridSpec(
            num_scalar_prefetch=0,
            grid=(B, n_s),
            in_specs=[
                pl.BlockSpec((1, C, tile_s, _LANE),
                             lambda bi, si: (bi, 0, si, 0)),
                pl.BlockSpec(memory_space=pltpu.MemorySpace.SMEM),
                pl.BlockSpec(memory_space=pltpu.MemorySpace.SMEM),
            ],
            out_specs=pl.BlockSpec((1, tile_s, _LANE),
                                   lambda bi, si: (bi, si, 0)),
        ),
        compiler_params=pltpu.CompilerParams(
            dimension_semantics=("parallel", "parallel"),
            vmem_limit_bytes=int(vmem_limit)),
        cost_estimate=cost,
    )(x, w, b)

    out = out.reshape(B, hw_pad)
    if hw_pad != HW:
        out = out[:, :HW]               # crop only when lane padding was needed
    return out.reshape(B, 1, H, W)


if __name__ == "__main__":
    key = jax.random.PRNGKey(0)
    kx, kw, kb = jax.random.split(key, 3)

    B, C, H, W = 2, 4, 16, 16
    x = jax.random.normal(kx, (B, C, H, W), dtype=jnp.float32)

    # Deterministic parameter init (shapes match nn.Conv2d(C, 1, kernel_size=1)).
    fan_in = C  # 1x1 kernel
    bound = 1.0 / (fan_in ** 0.5)
    weight = jax.random.uniform(kw, (1, C, 1, 1), jnp.float32, -bound, bound)
    bias = jax.random.uniform(kb, (1,), jnp.float32, -bound, bound)

    out = sc_module_forward(x, weight, bias)
    out = jax.block_until_ready(out)

    # Reference check in plain JAX (1x1 conv == channel contraction) + sigmoid.
    ref = jax.nn.sigmoid(
        jnp.einsum("bchw,c->bhw", x, weight.reshape(C)) + bias[0]
    )[:, None, :, :]
    assert out.shape == (B, 1, H, W)
    assert jnp.allclose(out, ref, atol=1e-5), "mismatch vs reference"

    print("KERNEL_OK")
</pallas_src>

<mosaic_0001>
module attributes {stable_mosaic.version = 11 : i64} {
  func.func @_sc_kernel(%arg0: i32, %arg1: i32, %arg2: memref<1x4x2x128xf32, #tpu.memory_space<vmem>>, %arg3: memref<4xf32, #tpu.memory_space<smem>>, %arg4: memref<1xf32, #tpu.memory_space<smem>>, %arg5: memref<1x2x128xf32, #tpu.memory_space<vmem>>) attributes {dimension_semantics = [#tpu.dimension_semantics<parallel>, #tpu.dimension_semantics<parallel>], iteration_bounds = array<i64: 2, 1>, scalar_prefetch = 0 : i64, scratch_operands = 0 : i64, tpu.core_type = #tpu.core_type<tc>, window_params = [{transform_indices = @transform_0, window_bounds = array<i64: 1, 4, 2, 128>}, {transform_indices = @transform_1, window_bounds = array<i64: 4>}, {transform_indices = @transform_2, window_bounds = array<i64: 1>}, {transform_indices = @transform_3, window_bounds = array<i64: 1, 2, 128>}]} {
    %c0 = arith.constant 0 : index
    %c0_0 = arith.constant 0 : index
    %c0_1 = arith.constant 0 : index
    %c0_2 = arith.constant 0 : index
    %0 = vector.load %arg2[%c0, %c0_0, %c0_1, %c0_2] : memref<1x4x2x128xf32, #tpu.memory_space<vmem>>, vector<1x1x2x128xf32>
    %1 = vector.shape_cast %0 : vector<1x1x2x128xf32> to vector<2x128xf32>
    %c0_3 = arith.constant 0 : index
    %2 = memref.load %arg3[%c0_3] : memref<4xf32, #tpu.memory_space<smem>>
    %3 = vector.broadcast %2 : f32 to vector<2x128xf32>
    %4 = arith.mulf %1, %3 : vector<2x128xf32>
    %c0_4 = arith.constant 0 : index
    %5 = memref.load %arg4[%c0_4] : memref<1xf32, #tpu.memory_space<smem>>
    %6 = vector.broadcast %5 : f32 to vector<2x128xf32>
    %7 = arith.addf %4, %6 : vector<2x128xf32>
    %c0_5 = arith.constant 0 : index
    %c1 = arith.constant 1 : index
    %c0_6 = arith.constant 0 : index
    %c0_7 = arith.constant 0 : index
    %8 = vector.load %arg2[%c0_5, %c1, %c0_6, %c0_7] : memref<1x4x2x128xf32, #tpu.memory_space<vmem>>, vector<1x1x2x128xf32>
    %9 = vector.shape_cast %8 : vector<1x1x2x128xf32> to vector<2x128xf32>
    %c1_8 = arith.constant 1 : index
    %10 = memref.load %arg3[%c1_8] : memref<4xf32, #tpu.memory_space<smem>>
    %11 = vector.broadcast %10 : f32 to vector<2x128xf32>
    %12 = arith.mulf %9, %11 : vector<2x128xf32>
    %13 = arith.addf %7, %12 : vector<2x128xf32>
    %c0_9 = arith.constant 0 : index
    %c2 = arith.constant 2 : index
    %c0_10 = arith.constant 0 : index
    %c0_11 = arith.constant 0 : index
    %14 = vector.load %arg2[%c0_9, %c2, %c0_10, %c0_11] : memref<1x4x2x128xf32, #tpu.memory_space<vmem>>, vector<1x1x2x128xf32>
    %15 = vector.shape_cast %14 : vector<1x1x2x128xf32> to vector<2x128xf32>
    %c2_12 = arith.constant 2 : index
    %16 = memref.load %arg3[%c2_12] : memref<4xf32, #tpu.memory_space<smem>>
    %17 = vector.broadcast %16 : f32 to vector<2x128xf32>
    %18 = arith.mulf %15, %17 : vector<2x128xf32>
    %19 = arith.addf %13, %18 : vector<2x128xf32>
    %c0_13 = arith.constant 0 : index
    %c3 = arith.constant 3 : index
    %c0_14 = arith.constant 0 : index
    %c0_15 = arith.constant 0 : index
    %20 = vector.load %arg2[%c0_13, %c3, %c0_14, %c0_15] : memref<1x4x2x128xf32, #tpu.memory_space<vmem>>, vector<1x1x2x128xf32>
    %21 = vector.shape_cast %20 : vector<1x1x2x128xf32> to vector<2x128xf32>
    %c3_16 = arith.constant 3 : index
    %22 = memref.load %arg3[%c3_16] : memref<4xf32, #tpu.memory_space<smem>>
    %23 = vector.broadcast %22 : f32 to vector<2x128xf32>
    %24 = arith.mulf %21, %23 : vector<2x128xf32>
    %25 = arith.addf %19, %24 : vector<2x128xf32>
    %26 = arith.negf %25 : vector<2x128xf32>
    %27 = math.exp %26 : vector<2x128xf32>
    %cst = arith.constant 1.000000e+00 : f32
    %28 = vector.broadcast %cst : f32 to vector<2x128xf32>
    %29 = arith.addf %28, %27 : vector<2x128xf32>
    %30 = arith.divf %28, %29 : vector<2x128xf32>
    %c0_17 = arith.constant 0 : index
    %c0_18 = arith.constant 0 : index
    %c0_19 = arith.constant 0 : index
    %31 = vector.load %arg5[%c0_17, %c0_18, %c0_19] : memref<1x2x128xf32, #tpu.memory_space<vmem>>, vector<1x2x128xf32>
    %32 = vector.shape_cast %31 : vector<1x2x128xf32> to vector<2x128xf32>
    %33 = vector.shape_cast %30 : vector<2x128xf32> to vector<1x2x128xf32>
    tpu.vector_store %arg5[%c0_17, %c0_18, %c0_19], %33 {strides = array<i32>} : memref<1x2x128xf32, #tpu.memory_space<vmem>>, vector<1x2x128xf32>,
    return
  }
  func.func @transform_0(%arg0: i32, %arg1: i32) -> (i32, i32, i32, i32) {
    %c0_i32 = arith.constant 0 : i32
    %c0_i32_0 = arith.constant 0 : i32
    %c0_i32_1 = arith.constant 0 : i32
    return %arg0, %c0_i32, %arg1, %c0_i32_0 : i32, i32, i32, i32
  }
  func.func @transform_1(%arg0: i32, %arg1: i32) -> i32 {
    %c0_i32 = arith.constant 0 : i32
    %c0_i32_0 = arith.constant 0 : i32
    return %c0_i32 : i32
  }
  func.func @transform_2(%arg0: i32, %arg1: i32) -> i32 {
    %c0_i32 = arith.constant 0 : i32
    %c0_i32_0 = arith.constant 0 : i32
    return %c0_i32 : i32
  }
  func.func @transform_3(%arg0: i32, %arg1: i32) -> (i32, i32, i32) {
    %c0_i32 = arith.constant 0 : i32
    %c0_i32_0 = arith.constant 0 : i32
    return %arg0, %arg1, %c0_i32 : i32, i32, i32
  }
}

</mosaic_0001>

<bundles_post_ra>
// kernel: tpu_custom_call.1
= control target key start
LH: loop header
LB: loop body
LE: loop exit
PB: predicated region body
PF: predicated region fallthrough
CT: control target
= control target key end

     0   :  { %s836_s0 = inlined_call_operand.hbm [shape: f32[2,4,2,128], index: 0, kind: input, shape index: {}]   ;;  %s837_s1 = inlined_call_operand.vmem [shape: f32[4], index: 1, kind: input, shape index: {}]   ;;  %s838_s2 = inlined_call_operand.<no memory space> [shape: f32[1], index: 2, kind: input, shape index: {}]   ;;  %s839_s3 = inlined_call_operand.hbm [shape: f32[2,2,128], index: 3, kind: output, shape index: {}]  }
   0x1   :  { %8 = sst [smem:[#allocation2]] %s838_s2 }
   0x2   :  { %9 = vsyncpa [#allocation4], 0 }
   0x3   :  { %11 = vsyncpa [#allocation4 + $0x1], 0 }
   0x4   :  { %12 = vsyncpa [#allocation6], 0 }
   0x5   :  { %13 = vsyncpa [#allocation5], 0 }
   0x6   :  { %15 = vsyncpa [#allocation5 + $0x1], 0  ;;  %s625_s14 = smov 0   ;;  %s627_s15 = smov 0  }
   0x7   :  { %s629_s16 = smov 0   ;;  %s631_s17 = smov 0  }
   0x8   :  { %s633_s18 = smov 0   ;;  %s635_s19 = smov 0  }
   0x9 LB: > { %s361_s2 = sadd.s32 4294967295, %s595_s19   ;;  %s362_s20 = sadd.s32 4294967294, %s595_s19   ;;  %s595_s19 = sphi %s635_s19, %s21_s19   ;;  %s591_s18 = sphi %s633_s18, %s862_s18   ;;  %s587_s17 = sphi %s631_s17, %s861_s17   ;;  %s583_s16 = sphi %s629_s16, %s860_s16   ;;  %s579_s15 = sphi %s627_s15, %s859_s15   ;;  %s575_s14 = sphi %s625_s14, %s858_s14  }
   0xa   : > { %s42_s21 = sadd.s32 1, %s583_s16  ;;  %p49_p0 = scmp.ne.s32.totalorder %s583_s16, %s579_s15 }
   0xb   : > { %p50_p1 = scmp.eq.s32.totalorder %s595_s19, 0  ;;  %p55_p2 = scmp.ne.s32.totalorder %s579_s15, %s575_s14 }
   0xc   : > { %p663_p3 = scmp.eq.s32.totalorder %s361_s2, 0  ;;  %p123_p4 = scmp.eq.s32.totalorder %s361_s2, 1 }
   0xd   : > { %p667_p5 = por %p50_p1, %p49_p0  ;;  %p129_p6 = scmp.eq.s32.totalorder %s362_s20, 1 }
   0xe   : > { %s844_s22 = scalar_select %p663_p3, 1, 0 }
   0xf   : > { %p673_p7 = por %p663_p3, %p55_p2  ;;  %p677_p8 = por %p123_p4, %p49_p0 }
  0x10   : > { %p681_p9 = por %p129_p6, %p55_p2  ;;  %p363_p10 = scmp.ge.s32.totalorder %s595_s19, 1 }
  0x11   : > { %s846_s24 = scalar_select %p673_p7, 1, 0 }
  0x12   : > { %s847_s25 = scalar_select %p677_p8, 1, 0 }
  0x13   : > { %s848_s26 = scalar_select %p681_p9, 1, 0 }
  0x14   : > { %p136_p11 = scmp.lt.s32.totalorder %s595_s19, 3  ;;  %s149_s29 = sshll.u32 %s837_s1, 4  ;;  %s150_s29 = int_to_ptr.vmem [resolvable:$true] %s149_s29 }
  0x15   : > { %p406_p0 = scmp.lt.s32.totalorder %s595_s19, 2  ;;  %s33_s6 = sadd.s32 1, %s591_s18 }
  0x16   : > { %p690_p12 = pnand %p363_p10, %p136_p11  ;;  %p711_p6 = scmp.ge.s32.totalorder %s33_s6, 2 }
  0x17   : > { %p700_p2 = pnand %p406_p0, %p667_p5  ;;  %s163_s8 = sand.u32 1, %s583_s16  }
  0x18   : > { %p393_p1 = pneg %p690_p12  ;;  %s464_s9 = scalar_lea.vmem %s150_s29, 16 }
  0x19   : > { %p465_p10 = scmp.ne.s32.totalorder %s150_s29, %s464_s9  ;;  %p472_p13 = scmp.lt.s32.totalorder %s150_s29, %s150_s29 }
  0x1a   : > { %p706_p4 = pnand %p393_p1, %p663_p3  ;;  %p473_p9 = scmp.lt.s32.totalorder %s464_s9, %s464_s9 }
  0x1c   : > { %p466_p11 = pneg %p706_p4  ;;  %p474_p8 = por %p473_p9, %p472_p13 }
  0x1e   : > { %p467_p5 = pnand %p466_p11, %p465_p10 }
  0x20   : > { %p468_p0 = pneg %p467_p5 }
  0x22   : > { %p475_p1 = pnand %p474_p8, %p468_p0 }
  0x24   : > { %478 = shalt.err (!%p475_p1)
}
  0x25   : > { %s597_s10 = smov [#allocation7]   ;;  %s864_s6 = smov (%p711_p6, %s33_s6), 0 }
  0x26   : > { %396 = dma.vmem_to_smem (!%p706_p4), %s150_s29, 16, %s597_s10, [#allocation6]  }
  0x27   : > { %s366_s11 = sshll.u32 %s163_s8, 3  ;;  %s37_s12 = ssub.s32 %s591_s18, %s864_s6 }
  0x28   : > { %p40_p9 = scmp.eq.s32.totalorder %s37_s12, 0  ;;  %s384_s13 = sshll.u32 %s591_s18, 7 }
  0x29   : > { %s730_s23 = scalar_lea.hbm %s836_s0, %s384_s13  ;;  %s167_s27 = scalar_lea.vmem [#allocation3], %s366_s11 }
  0x2a   : > { %s175_s28 = sshll.u32 %s167_s27, 4  ;;  %s739_s5 = scalar_lea.sflag [#allocation4], %s163_s8  ;;  %s737_s28 = int_to_ptr.vmem [resolvable:$true] %s175_s28 }
  0x2b   : > { %s735_s29 = scalar_select %p40_p9, %s583_s16, %s42_s21  }
  0x2c   : > { %s479_s7 = scalar_lea.hbm %s730_s23, 128  ;;  %p481_p13 = pneg %p700_p2 }
  0x2d   : > { %p480_p8 = scmp.ne.s32.totalorder %s730_s23, %s479_s7  ;;  %s484_s11 = scalar_lea.hbm %s836_s0, 256 }
  0x2e   : > { %p485_p10 = scmp.lt.u32.totalorder %s730_s23, %s836_s0  ;;  %p486_p11 = scmp.lt.u32.totalorder %s484_s11, %s479_s7 }
  0x2f   : > { %p482_p4 = pnand %p481_p13, %p480_p8  ;;  %p488_p0 = scmp.lt.u32.totalorder %s479_s7, %s730_s23 }
  0x30   : > { %p487_p5 = por %p486_p11, %p485_p10 }
  0x31   : > { %p483_p6 = pneg %p482_p4 }
  0x32   : > { %p489_p1 = por %p488_p0, %p487_p5 }
  0x34   : > { %p490_p9 = pnand %p489_p1, %p483_p6 }
  0x36   : > { %493 = shalt.err (!%p490_p9)
}
  0x37   : > { %s494_s21 = scalar_lea.vmem %s737_s28, 128  ;;  %s598_s8 = smov [#allocation3]  }
  0x38   : > { %p495_p8 = scmp.ne.s32.totalorder %s737_s28, %s494_s21  ;;  %s499_s2 = sshll.u32 %s598_s8, 4  ;;  %s500_s2 = int_to_ptr.vmem [resolvable:$false] %s499_s2 }
  0x39   : > { %s501_s20 = scalar_lea.vmem %s500_s2, 256  ;;  %p502_p7 = scmp.lt.s32.totalorder %s737_s28, %s500_s2 }
  0x3a   : > { %p497_p4 = pnand %p495_p8, %p481_p13  ;;  %p503_p10 = scmp.lt.s32.totalorder %s501_s20, %s494_s21 }
  0x3c   : > { %p498_p3 = pneg %p497_p4  ;;  %p504_p11 = por %p503_p10, %p502_p7 }
  0x3e   : > { %p505_p5 = pnand %p504_p11, %p498_p3 }
  0x40   : > { %508 = shalt.err (!%p505_p5)
}
  0x41   : > { %s599_s27 = smov 32   ;;  %s600_s7 = smov 2  }
  0x42   : > { %400 = dma.hbm_to_vmem [thread:$0]  (!%p700_p2), %s730_s23, 128, %s737_s28, %s739_s5, %s599_s27, %s599_s27, %s600_s7  }
  0x43   : > { %187 = sbr.rel (%p690_p12) target bundleno = 137 (0x89), region = 32  ;;  %s770_s9 = sand.u32 (!%p690_p12), 1, %s579_s15  }
  0x44   : > { %s370_s10 = sshll.u32 (!%p690_p12), %s770_s9, 3  ;;  %s190_s11 = scalar_lea.sflag (!%p690_p12), [#allocation4], %s770_s9 }
  0x45   : > { %s193_s12 = scalar_lea.vmem (!%p690_p12), [#allocation3], %s370_s10  ;;  %p853_p3 = scmp.ne.s32.totalorder (!%p690_p12), %s846_s24, 0 }
  0x4a   : > { %562 = dma.done.wait (%p853_p3), %s190_s11, 128  }
  0x4b   : > { %564 = vsyncadd (%p853_p3), %s190_s11, 4294967168  ;;  %p854_p7 = scmp.ne.s32.totalorder %s844_s22, 0 }
  0x4d   : > { %566 = dma.done.wait (%p854_p7), [#allocation6], 16  }
  0x4e   : > { %568 = vsyncadd (%p854_p7), [#allocation6], 4294967280 }
  0x4f   : > { %202 = sfence }
  0x50   : > { %s222_s30 = sld [smem:[#allocation7]]  ;;  %s374_s23 = sld [smem:[#allocation7 + $0x1]]  ;;  %v221_v0 = vld [vmem:[%s193_s12] sm:$0x3]  ;;  %v373_v2 = vld [vmem:[%s193_s12 + $0x2] sm:$0x3] }
  0x51   : > { %s225_s4 = sld [smem:[#allocation2]]  ;;  %s376_s28 = sld [smem:[#allocation7 + $0x2]]  ;;  %v375_v3 = vld [vmem:[%s193_s12 + $0x4] sm:$0x3]  ;;  %v377_v8 = vld [vmem:[%s193_s12 + $0x6] sm:$0x3] }
  0x52   : > { %s378_s5 = sld [smem:[#allocation7 + $0x3]]  ;;  %s372_s22 = sshll.u32 %s770_s9, 1 }
  0x53   : > { %s220_s24 = scalar_lea.vmem [#allocation8], %s372_s22  ;;  %s381_s21 = sshll.u32 %s587_s17, 5 }
  0x54   : > { %s268_s13 = sshll.u32 %s220_s24, 4  ;;  %s789_s20 = scalar_lea.hbm %s839_s3, %s381_s21  ;;  %s784_s13 = int_to_ptr.vmem [resolvable:$true] %s268_s13 }
  0x55   : > { %s254_s27 = scalar_lea.sflag [#allocation5], %s770_s9  ;;  %s509_s7 = scalar_lea.vmem %s784_s13, 32 }
  0x56   : > { %v223_v1 = vstv %s222_s30  ;;  %v231_v6 = vstv %s374_s23  ;;  %p510_p12 = scmp.ne.s32.totalorder %s784_s13, %s509_s7  ;;  %p855_p2 = scmp.ne.s32.totalorder %s847_s25, 0 }
  0x57   : > { %v224_v4 = vmul.f32 %v223_v1, %v221_v0  ;;  %v226_v5 = vstv %s225_s4  ;;  %v237_v7 = vstv %s376_s28  ;;  %v232_v10 = vmul.f32 %v373_v2, %v231_v6  ;;  %s601_s10 = smov [#allocation8]  }
  0x58   : > { %v238_v11 = vmul.f32 %v375_v3, %v237_v7  ;;  %v243_v12 = vstv %s378_s5  ;;  %p511_p13 = pnand %p510_p12, %p855_p2  ;;  %s513_s17 = sshll.u32 %s601_s10, 4  ;;  %s514_s17 = int_to_ptr.vmem [resolvable:$false] %s513_s17 }
  0x59   : > { %v227_v9 = vadd.f32 %v226_v5, %v224_v4  ;;  %v244_v14 = vmul.f32 %v377_v8, %v243_v12  ;;  %s515_s11 = scalar_lea.vmem %s514_s17, 64  ;;  %p516_p0 = scmp.lt.s32.totalorder %s784_s13, %s514_s17 }
  0x5a   : > { %p512_p6 = pneg %p511_p13  ;;  %p517_p1 = scmp.lt.s32.totalorder %s515_s11, %s509_s7 }
  0x5b   : > { %v233_v13 = vadd.f32 %v232_v10, %v227_v9 }
  0x5c   : > { %p518_p9 = por %p517_p1, %p516_p0 }
  0x5d   : > { %v239_v15 = vadd.f32 %v238_v11, %v233_v13 }
  0x5e   : > { %p519_p8 = pnand %p518_p9, %p512_p6 }
  0x5f   : > { %v245_v16 = vadd.f32 %v244_v14, %v239_v15 }
  0x61   : > { %v379_v17 = vmul.f32 -1.442695, %v245_v16 }
  0x63   : > { %460 = vpow2.f32 %v379_v17 }
  0x6d   : > { %v461_v18 = vpop.eup %460 }
  0x6e   : > { %v249_v19 = vadd.f32 1.0, %v461_v18 }
  0x70   : > { %462 = vrcp.f32 %v249_v19 }
  0x7a   : > { %v463_v20 = vpop.eup %462 }
  0x7b   : > { %252 = vst [vmem:[%s220_s24] sm:$0x3] %v463_v20 }
  0x7c   : > { %522 = shalt.err (!%p519_p8)
}
  0x7d   : > { %s523_s9 = scalar_lea.hbm %s789_s20, 32  ;;  %s527_s4 = scalar_lea.hbm %s839_s3, 64 }
  0x7e   : > { %p524_p4 = scmp.ne.s32.totalorder %s789_s20, %s523_s9  ;;  %p528_p5 = scmp.lt.u32.totalorder %s789_s20, %s839_s3 }
  0x7f   : > { %p529_p3 = scmp.lt.u32.totalorder %s527_s4, %s523_s9  ;;  %p531_p12 = scmp.lt.u32.totalorder %s523_s9, %s789_s20 }
  0x80   : > { %p525_p10 = pnand %p524_p4, %p855_p2 }
  0x81   : > { %p530_p7 = por %p529_p3, %p528_p5 }
  0x82   : > { %p526_p11 = pneg %p525_p10 }
  0x83   : > { %p532_p13 = por %p531_p12, %p530_p7 }
  0x85   : > { %p533_p6 = pnand %p532_p13, %p526_p11 }
  0x87   : > { %536 = shalt.err (!%p533_p6)
}
  0x88   : > { %391 = dma.vmem_to_hbm [thread:$0]  (%p855_p2), %s784_s13, 32, %s789_s20, %s254_s27  }
  0x89 PF: > { %s280_s5 = sand.u32 1, %s575_s14   ;;  %p856_p0 = scmp.ne.s32.totalorder %s848_s26, 0 }
  0x8a   : > { %p857_p1 = scmp.ge.s32.totalorder %s595_s19, 2  ;;  %s281_s22 = scalar_lea.sflag [#allocation5], %s280_s5 }
  0x8c   : > { %p402_p9 = pnand %p857_p1, %p856_p0 }
  0x8e   : > { %570 = dma.done.wait (!%p402_p9), %s281_s22, 32  }
  0x8f   : > { %572 = vsyncadd (!%p402_p9), %s281_s22, 4294967264  ;;  %s21_s19 = sadd.s32 1, %s595_s19   ;;  %s858_s14 = smov %s579_s15 }
  0x90   : > { %p18_p8 = scmp.ge.s32.totalorder %s21_s19, 4   ;;  %s859_s15 = smov %s583_s16 }
  0x91   : > { %s860_s16 = smov %s735_s29  ;;  %s861_s17 = smov %s591_s18 }
  0x92   : > { %s862_s18 = smov %s864_s6  ;;  %20 = sbr.rel (!%p18_p8) target bundleno = 9 (0x9), region = 85 }
  0x99   :  { %286 = vsyncpa [#allocation4], 1 }
  0x9a   :  { %288 = vsyncpa [#allocation4 + $0x1], 1 }
  0x9b   :  { %289 = vsyncpa [#allocation5], 1 }
  0x9c   :  { %291 = vsyncpa [#allocation5 + $0x1], 1 }
  0x9d   :  { %292 = vsyncpa [#allocation6], 1 }
  0x9e   :  { %294 = vsyncpa [#allocation6 + $0x1], 1 }

</bundles_post_ra>
